<compile_context>
chip_gen: v5e
topology: v5e:2x2
jax: 0.10.0
libtpu: 0.0.40
codegen_flags: <defaults>
</compile_context>

<pallas_src>
import jax
import jax.numpy as jnp
from jax import lax
from jax.experimental import pallas as pl
from jax.experimental.pallas import tpu as pltpu

SMOOTH = 1.0


def _vmem_capacity_bytes():
    try:
        info = pltpu.get_tpu_info()
        cap = getattr(info, "vmem_capacity_bytes", None)
        if cap:
            return int(cap)
    except Exception:
        pass
    return 64 * 1024 * 1024  # conservative (v7x per-TC VMEM)


def _pick_row_tile(rows, lanes, isz_sum, block_budget):
    """Largest multiple-of-8 divisor of `rows` whose combined (pred+mask) block
    fits the budget.  Falls back to the full dim when rows % 8 != 0 (the
    block second-to-last dim must then equal the array dim)."""
    if rows % 8 != 0:
        return rows
    max_rows = max(8, min(rows, block_budget // max(1, lanes * isz_sum)))
    max_rows -= max_rows % 8
    max_rows = max(max_rows, 8)
    best = 8
    for cand in range(8, max_rows + 1, 8):
        if rows % cand == 0:
            best = cand
    return best


def _make_kernel(tr, lanes, chunk, acc_rows):
    """Build the dice reduction kernel for block shape (1, 1, tr, lanes)."""
    folded = (tr % 8 == 0)
    fold = (tr // chunk) if folded else 1

    def kernel(p_ref, t_ref, inter_ref, total_ref, acc_pt_ref, acc_s_ref):
        r = pl.program_id(1)

        @pl.when(r == 0)
        def _init():
            acc_pt_ref[...] = jnp.zeros_like(acc_pt_ref)
            acc_s_ref[...] = jnp.zeros_like(acc_s_ref)

        if folded:
            def fold_chunk(ci, carry):
                pt_c, s_c = carry
                for j in range(chunk // 8):          # unrolled vreg-row sub-blocks
                    row = ci * chunk + j * 8
                    if not isinstance(row, int):
                        row = pl.multiple_of(row, 8)
                    p = p_ref[0, 0, pl.ds(row, 8), :].astype(jnp.float32)
                    t = t_ref[0, 0, pl.ds(row, 8), :].astype(jnp.float32)
                    pt_c = pt_c + p * t              # partial sum(p*t)
                    s_c = s_c + (p + t)              # partial sum(p)+sum(t)
                return pt_c, s_c

            init = (jnp.zeros((acc_rows, lanes), jnp.float32),
                    jnp.zeros((acc_rows, lanes), jnp.float32))
            if fold == 1:
                pt_c, s_c = fold_chunk(0, init)
            else:
                pt_c, s_c = lax.fori_loop(0, fold, fold_chunk, init)
            # Touch the VMEM accumulators exactly once per grid step.
            acc_pt_ref[...] += pt_c
            acc_s_ref[...] += s_c
        else:
            # Odd-row-count fallback (rows % 8 != 0): whole-block accumulate.
            p = p_ref[0, 0].astype(jnp.float32)
            t = t_ref[0, 0].astype(jnp.float32)
            acc_pt_ref[...] += p * t
            acc_s_ref[...] += p + t

        @pl.when(r == pl.num_programs(1) - 1)
        def _finalize():
            inter = jnp.sum(acc_pt_ref[...])
            total = jnp.sum(acc_s_ref[...])
            inter_ref[...] = jnp.full(inter_ref.shape, inter, dtype=jnp.float32)
            total_ref[...] = jnp.full(total_ref.shape, total, dtype=jnp.float32)

    return kernel


def dice_loss(y_pred, y_true):
    assert y_pred.shape == y_true.shape
    B, C, H, W = y_pred.shape
    isz_sum = (jnp.dtype(y_pred.dtype).itemsize +
               jnp.dtype(y_true.dtype).itemsize)

    # Lane-dense flattening of the (contiguous) channel plane when possible.
    N = H * W
    if N % 128 == 0:
        lanes = 128
        rows = N // 128
        y_pred = y_pred.reshape(B, C, rows, lanes)   # metadata-only reshape
        y_true = y_true.reshape(B, C, rows, lanes)
    else:
        lanes = W
        rows = H

    vmem_cap = _vmem_capacity_bytes()
    block_budget = min(vmem_cap // 8, 16 * 1024 * 1024)  # combined pred+mask bytes
    tr = _pick_row_tile(rows, lanes, isz_sum, block_budget)
    n_r = rows // tr

    # In-kernel fold granularity: up to 128 rows per fori_loop iteration.
    if tr % 8 == 0:
        chunk = 8
        for c in range(8, min(tr, 128) + 1, 8):
            if tr % c == 0:
                chunk = c
        acc_rows = 8
    else:
        chunk = tr
        acc_rows = tr

    kernel = _make_kernel(tr, lanes, chunk, acc_rows)

    # Channel index pinned to 0: only channel-0 bytes are DMA'd from HBM.
    in_spec = pl.BlockSpec((1, 1, tr, lanes), lambda b, r: (b, 0, r, 0))
    out_spec = pl.BlockSpec((1, 8, 128), lambda b, r: (b, 0, 0))

    n_elems = B * H * W
    cost = pl.CostEstimate(
        flops=4 * n_elems,
        transcendentals=0,
        bytes_accessed=n_elems * isz_sum + 2 * B * 8 * 128 * 4,
    )

    out_i, out_t = pl.pallas_call(
        kernel,
        out_shape=(jax.ShapeDtypeStruct((B, 8, 128), jnp.float32),
                   jax.ShapeDtypeStruct((B, 8, 128), jnp.float32)),
        grid_spec=pltpu.PrefetchScalarGridSpec(
            num_scalar_prefetch=0,
            grid=(B, n_r),
            in_specs=[in_spec, in_spec],
            out_specs=[out_spec, out_spec],
            scratch_shapes=[
                pltpu.VMEM((acc_rows, lanes), jnp.float32),
                pltpu.VMEM((acc_rows, lanes), jnp.float32),
            ],
        ),
        compiler_params=pltpu.CompilerParams(
            dimension_semantics=("parallel", "arbitrary"),
            vmem_limit_bytes=min(int(vmem_cap * 3 // 4), 100 * 1024 * 1024),
        ),
        cost_estimate=cost,
    )(y_pred, y_true)

    intersection = jnp.sum(out_i[:, 0, 0])
    total = jnp.sum(out_t[:, 0, 0])
    dsc = (2.0 * intersection + SMOOTH) / (total + SMOOTH)
    return 1.0 - dsc


if __name__ == "__main__":
    key = jax.random.PRNGKey(0)
    k1, k2 = jax.random.split(key)
    # batch=2, channels=4, spatial=16x16 (module only uses channel 0)
    y_pred = jax.nn.sigmoid(jax.random.normal(k1, (2, 4, 16, 16), jnp.float32))
    y_true = (jax.random.uniform(k2, (2, 4, 16, 16)) > 0.5).astype(jnp.float32)

    loss = dice_loss(y_pred, y_true)
    jax.block_until_ready(loss)

    # reference check in plain JAX
    p_ref = y_pred[:, 0].reshape(-1)
    t_ref = y_true[:, 0].reshape(-1)
    inter = jnp.sum(p_ref * t_ref)
    ref = 1.0 - (2.0 * inter + SMOOTH) / (jnp.sum(p_ref) + jnp.sum(t_ref) + SMOOTH)
    assert jnp.allclose(loss, ref, atol=1e-5), (loss, ref)

    print("KERNEL_OK")
</pallas_src>

<mosaic_0001>
module attributes {stable_mosaic.version = 11 : i64} {
  func.func @kernel(%arg0: i32, %arg1: i32, %arg2: memref<1x1x2x128xf32, #tpu.memory_space<vmem>>, %arg3: memref<1x1x2x128xf32, #tpu.memory_space<vmem>>, %arg4: memref<1x8x128xf32, #tpu.memory_space<vmem>>, %arg5: memref<1x8x128xf32, #tpu.memory_space<vmem>>, %arg6: memref<2x128xf32, #tpu.memory_space<vmem>>, %arg7: memref<2x128xf32, #tpu.memory_space<vmem>>) attributes {dimension_semantics = [#tpu.dimension_semantics<parallel>, #tpu.dimension_semantics<arbitrary>], iteration_bounds = array<i64: 2, 1>, scalar_prefetch = 0 : i64, scratch_operands = 2 : i64, tpu.core_type = #tpu.core_type<tc>, window_params = [{transform_indices = @transform_0, window_bounds = array<i64: 1, 1, 2, 128>}, {transform_indices = @transform_1, window_bounds = array<i64: 1, 1, 2, 128>}, {transform_indices = @transform_2, window_bounds = array<i64: 1, 8, 128>}, {transform_indices = @transform_3, window_bounds = array<i64: 1, 8, 128>}]} {
    %c0_i32 = arith.constant 0 : i32
    %0 = arith.cmpi eq, %arg1, %c0_i32 : i32
    %1 = arith.extui %0 : i1 to i32
    %c0_i32_0 = arith.constant 0 : i32
    %2 = arith.cmpi ne, %1, %c0_i32_0 : i32
    scf.if %2 {
      %cst = arith.constant 0.000000e+00 : f32
      %18 = vector.broadcast %cst : f32 to vector<2x128xf32>
      %c0_18 = arith.constant 0 : index
      %c0_19 = arith.constant 0 : index
      %19 = vector.load %arg6[%c0_18, %c0_19] : memref<2x128xf32, #tpu.memory_space<vmem>>, vector<2x128xf32>
      tpu.vector_store %arg6[%c0_18, %c0_19], %18 {strides = array<i32>} : memref<2x128xf32, #tpu.memory_space<vmem>>, vector<2x128xf32>,
      %cst_20 = arith.constant 0.000000e+00 : f32
      %20 = vector.broadcast %cst_20 : f32 to vector<2x128xf32>
      %c0_21 = arith.constant 0 : index
      %c0_22 = arith.constant 0 : index
      %21 = vector.load %arg7[%c0_21, %c0_22] : memref<2x128xf32, #tpu.memory_space<vmem>>, vector<2x128xf32>
      tpu.vector_store %arg7[%c0_21, %c0_22], %20 {strides = array<i32>} : memref<2x128xf32, #tpu.memory_space<vmem>>, vector<2x128xf32>,
    } else {
    }
    %c0 = arith.constant 0 : index
    %c0_1 = arith.constant 0 : index
    %c0_2 = arith.constant 0 : index
    %c0_3 = arith.constant 0 : index
    %3 = vector.load %arg2[%c0, %c0_1, %c0_2, %c0_3] : memref<1x1x2x128xf32, #tpu.memory_space<vmem>>, vector<1x1x2x128xf32>
    %4 = vector.shape_cast %3 : vector<1x1x2x128xf32> to vector<2x128xf32>
    %c0_4 = arith.constant 0 : index
    %c0_5 = arith.constant 0 : index
    %c0_6 = arith.constant 0 : index
    %c0_7 = arith.constant 0 : index
    %5 = vector.load %arg3[%c0_4, %c0_5, %c0_6, %c0_7] : memref<1x1x2x128xf32, #tpu.memory_space<vmem>>, vector<1x1x2x128xf32>
    %6 = vector.shape_cast %5 : vector<1x1x2x128xf32> to vector<2x128xf32>
    %c0_8 = arith.constant 0 : index
    %c0_9 = arith.constant 0 : index
    %7 = vector.load %arg6[%c0_8, %c0_9] : memref<2x128xf32, #tpu.memory_space<vmem>>, vector<2x128xf32>
    %8 = arith.mulf %4, %6 : vector<2x128xf32>
    %9 = arith.addf %7, %8 : vector<2x128xf32>
    %c0_10 = arith.constant 0 : index
    %c0_11 = arith.constant 0 : index
    %10 = vector.load %arg6[%c0_10, %c0_11] : memref<2x128xf32, #tpu.memory_space<vmem>>, vector<2x128xf32>
    tpu.vector_store %arg6[%c0_10, %c0_11], %9 {strides = array<i32>} : memref<2x128xf32, #tpu.memory_space<vmem>>, vector<2x128xf32>,
    %c0_12 = arith.constant 0 : index
    %c0_13 = arith.constant 0 : index
    %11 = vector.load %arg7[%c0_12, %c0_13] : memref<2x128xf32, #tpu.memory_space<vmem>>, vector<2x128xf32>
    %12 = arith.addf %4, %6 : vector<2x128xf32>
    %13 = arith.addf %11, %12 : vector<2x128xf32>
    %c0_14 = arith.constant 0 : index
    %c0_15 = arith.constant 0 : index
    %14 = vector.load %arg7[%c0_14, %c0_15] : memref<2x128xf32, #tpu.memory_space<vmem>>, vector<2x128xf32>
    tpu.vector_store %arg7[%c0_14, %c0_15], %13 {strides = array<i32>} : memref<2x128xf32, #tpu.memory_space<vmem>>, vector<2x128xf32>,
    %c0_i32_16 = arith.constant 0 : i32
    %15 = arith.cmpi eq, %arg1, %c0_i32_16 : i32
    %16 = arith.extui %15 : i1 to i32
    %c0_i32_17 = arith.constant 0 : i32
    %17 = arith.cmpi ne, %16, %c0_i32_17 : i32
    scf.if %17 {
      %c0_18 = arith.constant 0 : index
      %c0_19 = arith.constant 0 : index
      %18 = vector.load %arg6[%c0_18, %c0_19] : memref<2x128xf32, #tpu.memory_space<vmem>>, vector<2x128xf32>
      %19 = vector.shape_cast %18 : vector<2x128xf32> to vector<1x2x128xf32>
      %cst = arith.constant dense<0.000000e+00> : vector<1xf32>
      %20 = vector.multi_reduction <add>, %19, %cst [1, 2] : vector<1x2x128xf32> to vector<1xf32>
      %21 = vector.shape_cast %20 : vector<1xf32> to vector<1x1x1xf32>
      %22 = vector.extract %21[0, 0, 0] : f32 from vector<1x1x1xf32>
      %c0_20 = arith.constant 0 : index
      %c0_21 = arith.constant 0 : index
      %23 = vector.load %arg7[%c0_20, %c0_21] : memref<2x128xf32, #tpu.memory_space<vmem>>, vector<2x128xf32>
      %24 = vector.shape_cast %23 : vector<2x128xf32> to vector<1x2x128xf32>
      %cst_22 = arith.constant dense<0.000000e+00> : vector<1xf32>
      %25 = vector.multi_reduction <add>, %24, %cst_22 [1, 2] : vector<1x2x128xf32> to vector<1xf32>
      %26 = vector.shape_cast %25 : vector<1xf32> to vector<1x1x1xf32>
      %27 = vector.extract %26[0, 0, 0] : f32 from vector<1x1x1xf32>
      %28 = vector.broadcast %22 : f32 to vector<1x8x128xf32>
      %c0_23 = arith.constant 0 : index
      %c0_24 = arith.constant 0 : index
      %c0_25 = arith.constant 0 : index
      %29 = vector.load %arg4[%c0_23, %c0_24, %c0_25] : memref<1x8x128xf32, #tpu.memory_space<vmem>>, vector<1x8x128xf32>
      tpu.vector_store %arg4[%c0_23, %c0_24, %c0_25], %28 {strides = array<i32>} : memref<1x8x128xf32, #tpu.memory_space<vmem>>, vector<1x8x128xf32>,
      %30 = vector.broadcast %27 : f32 to vector<1x8x128xf32>
      %c0_26 = arith.constant 0 : index
      %c0_27 = arith.constant 0 : index
      %c0_28 = arith.constant 0 : index
      %31 = vector.load %arg5[%c0_26, %c0_27, %c0_28] : memref<1x8x128xf32, #tpu.memory_space<vmem>>, vector<1x8x128xf32>
      tpu.vector_store %arg5[%c0_26, %c0_27, %c0_28], %30 {strides = array<i32>} : memref<1x8x128xf32, #tpu.memory_space<vmem>>, vector<1x8x128xf32>,
    } else {
    }
    return
  }
  func.func @transform_0(%arg0: i32, %arg1: i32) -> (i32, i32, i32, i32) {
    %c0_i32 = arith.constant 0 : i32
    %c0_i32_0 = arith.constant 0 : i32
    %c0_i32_1 = arith.constant 0 : i32
    return %arg0, %c0_i32, %arg1, %c0_i32_0 : i32, i32, i32, i32
  }
  func.func @transform_1(%arg0: i32, %arg1: i32) -> (i32, i32, i32, i32) {
    %c0_i32 = arith.constant 0 : i32
    %c0_i32_0 = arith.constant 0 : i32
    %c0_i32_1 = arith.constant 0 : i32
    return %arg0, %c0_i32, %arg1, %c0_i32_0 : i32, i32, i32, i32
  }
  func.func @transform_2(%arg0: i32, %arg1: i32) -> (i32, i32, i32) {
    %c0_i32 = arith.constant 0 : i32
    %c0_i32_0 = arith.constant 0 : i32
    %c0_i32_1 = arith.constant 0 : i32
    return %arg0, %c0_i32, %c0_i32_0 : i32, i32, i32
  }
  func.func @transform_3(%arg0: i32, %arg1: i32) -> (i32, i32, i32) {
    %c0_i32 = arith.constant 0 : i32
    %c0_i32_0 = arith.constant 0 : i32
    %c0_i32_1 = arith.constant 0 : i32
    return %arg0, %c0_i32, %c0_i32_0 : i32, i32, i32
  }
}

</mosaic_0001>

<bundles_post_ra>
// kernel: tpu_custom_call.1
= control target key start
LH: loop header
LB: loop body
LE: loop exit
PB: predicated region body
PF: predicated region fallthrough
CT: control target
= control target key end

     0   :  { %9 = vsyncpa [#allocation5], 0  ;;  %s921_s0 = inlined_call_operand.hbm [shape: f32[2,4,2,128], index: 0, kind: input, shape index: {}]   ;;  %s922_s1 = inlined_call_operand.hbm [shape: f32[2,4,2,128], index: 1, kind: input, shape index: {}]   ;;  %s923_s2 = inlined_call_operand.hbm [shape: f32[2,8,128], index: 2, kind: output, shape index: {0}]   ;;  %s924_s3 = inlined_call_operand.hbm [shape: f32[2,8,128], index: 3, kind: output, shape index: {1}]  }
   0x1   :  { %11 = vsyncpa [#allocation5 + $0x1], 0 }
   0x2   :  { %12 = vsyncpa [#allocation8], 0 }
   0x3   :  { %14 = vsyncpa [#allocation8 + $0x1], 0 }
   0x4   :  { %15 = vsyncpa [#allocation6], 0 }
   0x5   :  { %17 = vsyncpa [#allocation6 + $0x1], 0 }
   0x6   :  { %18 = vsyncpa [#allocation11], 0 }
   0x7   :  { %20 = vsyncpa [#allocation11 + $0x1], 0  ;;  %s778_s12 = smov 0   ;;  %s780_s13 = smov 0  }
   0x8   :  { %s782_s14 = smov 0   ;;  %s784_s15 = smov 0  }
   0x9   :  { %s786_s16 = smov 0   ;;  %s788_s17 = smov 0  }
   0xa LB: > { %s477_s18 = sadd.s32 4294967295, %s755_s17   ;;  %s478_s19 = sadd.s32 4294967294, %s755_s17   ;;  %s755_s17 = sphi %s788_s17, %s26_s17   ;;  %s751_s16 = sphi %s786_s16, %s933_s16   ;;  %s747_s15 = sphi %s784_s15, %s932_s15   ;;  %s743_s14 = sphi %s782_s14, %s931_s14   ;;  %s739_s13 = sphi %s780_s13, %s930_s13   ;;  %s735_s12 = sphi %s778_s12, %s929_s12  }
   0xb   : > { %s38_s20 = sadd.s32 1, %s751_s16  ;;  %s47_s21 = sadd.s32 1, %s743_s14 }
   0xc   : > { %p40_p0 = scmp.ge.s32.totalorder %s38_s20, 2  ;;  %p54_p1 = scmp.ne.s32.totalorder %s743_s14, %s739_s13 }
   0xd   : > { %p55_p2 = scmp.eq.s32.totalorder %s755_s17, 0  ;;  %p60_p3 = scmp.ne.s32.totalorder %s739_s13, %s735_s12 }
   0xe   : > { %s935_s20 = smov (%p40_p0, %s38_s20), 0  ;;  %p61_p5 = scmp.eq.s32.totalorder %s477_s18, 0 }
   0xf   : > { %p819_p4 = por %p55_p2, %p54_p1  ;;  %s42_s23 = ssub.s32 %s751_s16, %s935_s20 }
  0x10   : > { %p112_p6 = scmp.eq.s32.totalorder %s477_s18, 1  ;;  %p45_p7 = scmp.eq.s32.totalorder %s42_s23, 0 }
  0x11   : > { %p825_p8 = por %p61_p5, %p60_p3  ;;  %p118_p10 = scmp.eq.s32.totalorder %s478_s19, 1 }
  0x12   : > { %p829_p9 = por %p112_p6, %p54_p1  ;;  %p480_p12 = scmp.ge.s32.totalorder %s755_s17, 2 }
  0x13   : > { %s834_s26 = scalar_select %p45_p7, %s743_s14, %s47_s21  }
  0x14   : > { %p836_p11 = por %p118_p10, %p60_p3  ;;  %p526_p13 = scmp.lt.s32.totalorder %s755_s17, 2 }
  0x15   : > { %s164_s28 = sand.u32 1, %s743_s14   ;;  %s498_s30 = sshll.u32 %s751_s16, 3 }
  0x16   : > { %s481_s29 = sshll.u32 %s164_s28, 1  ;;  %s174_s6 = scalar_lea.hbm %s921_s0, %s498_s30 }
  0x17   : > { %s168_s7 = scalar_lea.vmem [#allocation4], %s481_s29  ;;  %s176_s9 = sshll.u32 %s174_s6, 4  ;;  %s177_s9 = int_to_ptr.hbm [resolvable:$true] %s176_s9 }
  0x18   : > { %s178_s8 = sshll.u32 %s168_s7, 4  ;;  %p513_p0 = pnand %p526_p13, %p819_p4  ;;  %s179_s8 = int_to_ptr.vmem [resolvable:$true] %s178_s8 }
  0x19   : > { %p487_p1 = scmp.ge.s32.totalorder %s755_s17, 1  ;;  %p204_p2 = scmp.lt.s32.totalorder %s755_s17, 3 }
  0x1a   : > { %s165_s10 = scalar_lea.sflag [#allocation5], %s164_s28  ;;  %s195_s19 = scalar_lea.hbm %s922_s1, %s498_s30 }
  0x1b   : > { %515 = dma.hbm_to_vmem [thread:$0]  (!%p513_p0), %s177_s9, 32, %s179_s8, %s165_s10  }
  0x1c   : > { %p205_p3 = pnand %p487_p1, %p204_p2  ;;  %s189_s21 = scalar_lea.vmem [#allocation7], %s481_s29 }
  0x1d   : > { %s199_s23 = sshll.u32 %s189_s21, 4  ;;  %s197_s4 = sshll.u32 %s195_s19, 4  ;;  %s200_s23 = int_to_ptr.vmem [resolvable:$true] %s199_s23  ;;  %s198_s4 = int_to_ptr.hbm [resolvable:$true] %s197_s4 }
  0x1e   : > { %s186_s5 = scalar_lea.sflag [#allocation8], %s164_s28  ;;  %208 = sbr.rel (%p205_p3) target bundleno = 254 (0xfe), region = 28 }
  0x1f   : > { %518 = dma.hbm_to_vmem [thread:$0]  (!%p513_p0), %s198_s4, 32, %s200_s23, %s186_s5  }
  0x20   : > { %s855_s22 = sand.u32 (!%p205_p3), 1, %s739_s13  }
  0x21   : > { %s488_s6 = sshll.u32 (!%p205_p3), %s855_s22, 1  ;;  %s211_s7 = scalar_lea.sflag (!%p205_p3), [#allocation5], %s855_s22 }
  0x22   : > { %s214_s8 = scalar_lea.vmem (!%p205_p3), [#allocation4], %s488_s6 }
  0x23   : > { %718 = dma.done.wait (%p825_p8), %s211_s7, 32  }
  0x24   : > { %720 = vsyncadd (%p825_p8), %s211_s7, 4294967264  ;;  %s221_s29 = scalar_lea.sflag [#allocation8], %s855_s22  ;;  %s224_s28 = scalar_lea.vmem [#allocation7], %s488_s6 }
  0x25   : > { %722 = dma.done.wait (%p825_p8), %s221_s29, 32  }
  0x26   : > { %724 = vsyncadd (%p825_p8), %s221_s29, 4294967264  ;;  %v757_v0 = vmov 0.0   ;;  %v264_v1 = vld [vmem:[%s214_s8] sm:$0x3]  ;;  %v265_v2 = vld [vmem:[%s224_s28] sm:$0x3] }
  0x27   : > { %262 = vst [vmem:[#allocation2] sm:$0x3] %v757_v0  ;;  %v267_v4 = vmul.f32 %v265_v2, %v264_v1  ;;  %v271_v5 = vadd.f32 %v265_v2, %v264_v1  ;;  %vm278_vm0 = vcmask 1041408   ;;  %s494_s24 = sshll.u32 %s747_s15, 3  ;;  %s490_s30 = sshll.u32 %s855_s22, 3 }
  0x28   : > { %263 = vst [vmem:[#allocation3] sm:$0x3] %v757_v0  ;;  %s320_s11 = scalar_lea.hbm %s923_s2, %s494_s24  ;;  %s250_s18 = scalar_lea.vmem [#allocation9], %s490_s30 }
  0x29   : > { %s322_s19 = sshll.u32 %s250_s18, 4  ;;  %s324_s21 = sshll.u32 %s320_s11, 4  ;;  %s323_s19 = int_to_ptr.vmem [resolvable:$true] %s322_s19  ;;  %s325_s21 = int_to_ptr.hbm [resolvable:$true] %s324_s21 }
  0x2a   : > { %s334_s6 = scalar_lea.hbm %s924_s3, %s494_s24  ;;  %s305_s7 = scalar_lea.sflag [#allocation6], %s855_s22 }
  0x2b   : > { %s651_s15 = sshra.s32 %s325_s21, 4  ;;  %s657_s9 = scalar_lea.hbm %s923_s2, 16  ;;  %s652_s15 = int_to_ptr.hbm [resolvable:$true] %s651_s15 }
  0x2c   : > { %s653_s8 = scalar_lea.hbm %s652_s15, 8  ;;  %p658_p7 = scmp.lt.s32.totalorder %s652_s15, %s923_s2 }
  0x2d   : > { %p654_p4 = scmp.ne.s32.totalorder %s652_s15, %s653_s8  ;;  %p659_p8 = scmp.lt.s32.totalorder %s657_s9, %s653_s8 }
  0x2e   : > { %v266_v3 = vld [vmem:[#allocation2] sm:$0x3] }
  0x2f   : > { %v270_v6 = vld [vmem:[#allocation3] sm:$0x3]  ;;  %v268_v7 = vadd.f32 %v267_v4, %v266_v3  ;;  %p655_p5 = pnand %p654_p4, %p829_p9  ;;  %p660_p10 = por %p659_p8, %p658_p7 }
  0x30   : > { %v272_v8 = vadd.f32 %v271_v5, %v270_v6 }
  0x31   : > { %269 = vst [vmem:[#allocation2] sm:$0x3] %v268_v7  ;;  %p656_p6 = pneg %p655_p5 }
  0x32   : > { %273 = vst [vmem:[#allocation3] sm:$0x3] %v272_v8 }
  0x33   : > { %p661_p13 = pnand %p660_p10, %p656_p6 }
  0x38   : > { %v277_v9 = vld [vmem:[#allocation2] sm:$0x3] }
  0x39   : > { %v279_v10 = vsel %vm278_vm0, %v277_v9, 0.0  ;;  %v289_v11 = vld [vmem:[#allocation3] sm:$0x3] }
  0x3a   : > { %280 = vadd.xlane.f32.xlu0 %v279_v10  ;;  %v290_v12 = vsel %vm278_vm0, %v289_v11, 0.0 }
  0x42   : > { %291 = vadd.xlane.f32.xlu0 %v290_v12 }
  0xad   : > { %v281_v13 = vpop.xlane.xlu0 %280 }
  0xae   : > { %v282_v14 = vrot.slane %v281_v13, 4 }
  0xb0   : > { %v283_v15 = vadd.f32 %v282_v14, %v281_v13 }
  0xb2   : > { %v284_v16 = vrot.slane %v283_v15, 2 }
  0xb4   : > { %v285_v17 = vadd.f32 %v284_v16, %v283_v15 }
  0xb5   : > { %v292_v18 = vpop.xlane.xlu0 %291 }
  0xb6   : > { %v293_v19 = vrot.slane %v292_v18, 4  ;;  %v286_v20 = vrot.slane %v285_v17, 1 }
  0xb8   : > { %v294_v21 = vadd.f32 %v293_v19, %v292_v18  ;;  %v287_v22 = vadd.f32 %v286_v20, %v285_v17 }
  0xba   : > { %v295_v23 = vrot.slane %v294_v21, 2  ;;  %500 = vpush %v287_v22 }
  0xbc   : > { %v296_v24 = vadd.f32 %v295_v23, %v294_v21 }
  0xbe   : > { %v297_v25 = vrot.slane %v296_v24, 1 }
  0xc0   : > { %v298_v26 = vadd.f32 %v297_v25, %v296_v24 }
  0xc2   : > { %502 = vpush %v298_v26 }
  0xeb   : > { %s501_s23 = spop %500 }
  0xec   : > { %v300_v27 = vstv %s501_s23 }
  0xed   : > { %301 = vst [vmem:[%s250_s18] sm:$0xff] %v300_v27 }
  0xee   : > { %664 = shalt.err (!%p661_p13)
}
  0xef   : > { %508 = dma.vmem_to_hbm [thread:$0]  (%p829_p9), %s323_s19, 128, %s325_s21, %s305_s7  }
  0xf0   : > { %s257_s24 = scalar_lea.vmem [#allocation10], %s490_s30  ;;  %s338_s23 = sshll.u32 %s334_s6, 4  ;;  %s339_s23 = int_to_ptr.hbm [resolvable:$true] %s338_s23 }
  0xf1   : > { %s336_s18 = sshll.u32 %s257_s24, 4  ;;  %s310_s5 = scalar_lea.sflag [#allocation11], %s855_s22  ;;  %s337_s18 = int_to_ptr.vmem [resolvable:$true] %s336_s18 }
  0xf2   : > { %s679_s29 = sshra.s32 %s339_s23, 4  ;;  %s685_s19 = scalar_lea.hbm %s924_s3, 16  ;;  %s680_s29 = int_to_ptr.hbm [resolvable:$true] %s679_s29 }
  0xf3   : > { %s503_s4 = spop %502  ;;  %s681_s15 = scalar_lea.hbm %s680_s29, 8 }
  0xf4   : > { %v302_v28 = vstv %s503_s4  ;;  %p682_p0 = scmp.ne.s32.totalorder %s680_s29, %s681_s15  ;;  %p686_p3 = scmp.lt.s32.totalorder %s680_s29, %s924_s3 }
  0xf5   : > { %303 = vst [vmem:[%s257_s24] sm:$0xff] %v302_v28  ;;  %p687_p4 = scmp.lt.s32.totalorder %s685_s19, %s681_s15 }
  0xf6   : > { %p683_p1 = pnand %p682_p0, %p829_p9 }
  0xf7   : > { %p688_p5 = por %p687_p4, %p686_p3 }
  0xf8   : > { %p684_p2 = pneg %p683_p1 }
  0xfa   : > { %p689_p6 = pnand %p688_p5, %p684_p2 }
  0xfc   : > { %692 = shalt.err (!%p689_p6)
}
  0xfd   : > { %509 = dma.vmem_to_hbm [thread:$0]  (%p829_p9), %s337_s18, 128, %s339_s23, %s310_s5  }
  0xfe PF: > { %s350_s22 = sand.u32 1, %s735_s12   ;;  %p520_p7 = pnand %p480_p12, %p836_p11 }
  0xff   : > { %s351_s6 = scalar_lea.sflag [#allocation6], %s350_s22 }
 0x100   : > { %p521_p8 = pneg %p520_p7 }
 0x102   : > { %726 = dma.done.wait (%p521_p8), %s351_s6, 128  }
 0x103   : > { %728 = vsyncadd (%p521_p8), %s351_s6, 4294967168  ;;  %s361_s7 = scalar_lea.sflag [#allocation11], %s350_s22 }
 0x104   : > { %730 = dma.done.wait (%p521_p8), %s361_s7, 128  }
 0x105   : > { %732 = vsyncadd (%p521_p8), %s361_s7, 4294967168  ;;  %s26_s17 = sadd.s32 1, %s755_s17   ;;  %s929_s12 = smov %s739_s13 }
 0x106   : > { %p23_p10 = scmp.ge.s32.totalorder %s26_s17, 4   ;;  %s930_s13 = smov %s743_s14 }
 0x107   : > { %s931_s14 = smov %s834_s26  ;;  %s932_s15 = smov %s751_s16 }
 0x108   : > { %s933_s16 = smov %s935_s20  ;;  %25 = sbr.rel (!%p23_p10) target bundleno = 10 (0xa), region = 111 }
 0x10d   :  { %367 = vsyncpa [#allocation5], 1 }
 0x10e   :  { %369 = vsyncpa [#allocation5 + $0x1], 1 }
 0x10f   :  { %370 = vsyncpa [#allocation8], 1 }
 0x110   :  { %372 = vsyncpa [#allocation8 + $0x1], 1 }
 0x111   :  { %373 = vsyncpa [#allocation6], 1 }
 0x112   :  { %375 = vsyncpa [#allocation6 + $0x1], 1 }
 0x113   :  { %376 = vsyncpa [#allocation11], 1 }
 0x114   :  { %378 = vsyncpa [#allocation11 + $0x1], 1 }

</bundles_post_ra>
